<compile_context>
chip_gen: v5e
topology: v5e:2x2
jax: 0.10.0
libtpu: 0.0.40
codegen_flags: <defaults>
</compile_context>

<pallas_src>
import functools

import jax
import jax.numpy as jnp
from jax import lax
from jax.experimental import pallas as pl
from jax.experimental.pallas import tpu as pltpu


# ---------------------------------------------------------------------------
# Pallas kernel: one N-tile per grid step, all P groups fused.
# ---------------------------------------------------------------------------
def _pq_kernel(z_ref, cb_ref, zq_ref, prob_ref, idx_ref, sse_ref, *,
               num_pq, pq_dim, num_codes, jsd_ts, n_valid, mxu_bf16):
    """Refs (per grid step t):
         z_ref    : (D, TN)   f32   D = num_pq * pq_dim, pixels on lanes
         cb_ref   : (P, K, pd) f32  resident codebooks
         zq_ref   : (D, TN)   f32
         prob_ref : (P*K, TN) f32   group-major rows
         idx_ref  : (P, TN)   i32
         sse_ref  : (1, 1, 1) f32   per-tile SSE partial (summed in wrapper)
    """
    tile_n = z_ref.shape[1]
    inv_ts = 1.0 / jsd_ts

    # Column-validity mask for the SSE when N was padded up to a tile multiple
    # (static python condition -> no cost when there is no padding).
    padded = (n_valid % tile_n) != 0
    if padded:
        col = (pl.program_id(0) * tile_n
               + lax.broadcasted_iota(jnp.int32, (1, tile_n), 1))
        valid_col = col < n_valid                       # (1, TN) bool

    sse_total = jnp.zeros((), jnp.float32)

    for p in range(num_pq):                             # static, P is small
        z = z_ref[pl.ds(p * pq_dim, pq_dim), :]         # (pd, TN)
        cb = cb_ref[p]                                  # (K, pd)

        # Squared-distance up to a per-pixel constant:
        #   dist' = ||c||^2 - 2 c z   (softmax over K and argmin over K are
        #   invariant to the dropped per-column ||z||^2 term).
        cb_sq = jnp.sum(cb * cb, axis=1, keepdims=True)  # (K, 1)
        if mxu_bf16:
            # v6e/v7x/v5e MXUs are bf16-native; f32 accumulate. May flip
            # argmin on near-ties vs. an f32 reference -> off by default.
            cross = jnp.dot(cb.astype(jnp.bfloat16), z.astype(jnp.bfloat16),
                            preferred_element_type=jnp.float32)
        else:
            cross = jnp.dot(cb, z, preferred_element_type=jnp.float32)
        dist = cb_sq - 2.0 * cross                       # (K, TN)

        # Numerically-stable softmax over the K (sublane) axis.
        logits = dist * (-inv_ts)
        m = jnp.max(logits, axis=0, keepdims=True)       # (1, TN)
        e = jnp.exp(logits - m)                          # (K, TN)
        denom = jnp.sum(e, axis=0, keepdims=True)        # (1, TN)
        inv = pl.reciprocal(denom, approx=True)
        inv = inv * (2.0 - denom * inv)                  # Newton -> ~f32 acc.
        prob_ref[pl.ds(p * num_codes, num_codes), :] = e * inv

        # argmin over K with first-occurrence tie-break.
        d_min = jnp.min(dist, axis=0, keepdims=True)     # (1, TN)
        iota_k = lax.broadcasted_iota(jnp.int32, dist.shape, 0)
        idx = jnp.min(jnp.where(dist == d_min, iota_k, num_codes),
                      axis=0, keepdims=True)             # (1, TN) i32
        idx_ref[pl.ds(p, 1), :] = idx

        # Gather codebook rows via one-hot matmul: (pd, K) @ (K, TN).
        one_hot = (iota_k == idx).astype(cb.dtype)       # (K, TN)
        z_q = lax.dot_general(cb, one_hot, (((0,), (0,)), ((), ())),
                              preferred_element_type=jnp.float32)  # (pd, TN)
        zq_ref[pl.ds(p * pq_dim, pq_dim), :] = z_q

        # Sum-of-squared-error partial for the MSE losses.
        diff = z_q - z
        sq = diff * diff
        if padded:
            sq = jnp.where(valid_col, sq, 0.0)
        sse_total = sse_total + jnp.sum(sq)

    sse_ref[...] = sse_total.reshape(1, 1, 1)


def _choose_tile_n(n, bytes_per_col, vmem_budget_bytes=12 * 2**20,
                   max_tile=2048):
    """Largest lane-tile (multiple of 128) whose double-buffered working set
    fits the VMEM budget (conservative for v7x's 64 MiB VMEM)."""
    tn = vmem_budget_bytes // (2 * bytes_per_col)      # 2x: double-buffered
    tn = int(max(128, min(max_tile, (tn // 128) * 128)))
    if tn >= n:
        return n                                        # single full-N tile
    return tn


def _run_pq_kernel(z_dn, codebooks, *, jsd_ts, tile_n, n_valid, mxu_bf16):
    """z_dn: (D, Np) f32 (Np multiple of tile_n), codebooks: (P, K, pd) f32."""
    D, Np = z_dn.shape
    P, K, pd = codebooks.shape
    num_tiles = Np // tile_n

    kernel = functools.partial(
        _pq_kernel, num_pq=P, pq_dim=pd, num_codes=K, jsd_ts=float(jsd_ts),
        n_valid=n_valid, mxu_bf16=mxu_bf16)

    out_shapes = (
        jax.ShapeDtypeStruct((D, Np), jnp.float32),       # z_q (lane-dense)
        jax.ShapeDtypeStruct((P * K, Np), jnp.float32),   # probs (lane-dense)
        jax.ShapeDtypeStruct((P, Np), jnp.int32),         # indices (lane-dense)
        jax.ShapeDtypeStruct((num_tiles, 1, 1), jnp.float32),  # SSE partials
    )
    in_specs = [
        pl.BlockSpec((D, tile_n), lambda t: (0, t)),
        pl.BlockSpec((P, K, pd), lambda t: (0, 0, 0)),    # resident codebooks
    ]
    out_specs = [
        pl.BlockSpec((D, tile_n), lambda t: (0, t)),
        pl.BlockSpec((P * K, tile_n), lambda t: (0, t)),
        pl.BlockSpec((P, tile_n), lambda t: (0, t)),
        pl.BlockSpec((1, 1, 1), lambda t: (t, 0, 0)),
    ]

    # Explicit VMEM budget: double-buffered N-tiled blocks + codebooks + slack,
    # kept well under v7x's 64 MiB physical VMEM.
    bytes_per_col = 4 * (2 * D + P * K + P)
    vmem_limit = int(min(max(4 * bytes_per_col * tile_n
                             + 8 * P * K * pd + (4 << 20), 16 << 20), 48 << 20))

    return pl.pallas_call(
        kernel,
        out_shape=out_shapes,
        grid_spec=pltpu.PrefetchScalarGridSpec(
            num_scalar_prefetch=0,
            grid=(num_tiles,),
            in_specs=in_specs,
            out_specs=out_specs,
        ),
        compiler_params=pltpu.CompilerParams(
            dimension_semantics=("parallel",),   # N-tiles split across TCs
            vmem_limit_bytes=vmem_limit),
    )(z_dn, codebooks)


# ---------------------------------------------------------------------------
# ProductQuantizerWrapper forward (eval mode) — JAX wrapper around the kernel.
# ---------------------------------------------------------------------------
def product_quantizer_forward(z, codebooks, *, beta=0.25, book=1.0,
                              jsd_ts=1.0, mxu_bf16=False):
    """
    z:          (B, D, H, W) float32, NCHW
    codebooks:  (num_pq, K, pq_dim) float32
    Returns (z_quantized, (z_split, z_quantized_list, z_quantized_index),
             outputs, distance_prob) mirroring the PyTorch module.
    """
    B, D, H, W = z.shape
    P, K, pd = codebooks.shape
    assert D == P * pd
    N = B * H * W

    # NCHW -> (D, N): channels on sublanes, pixels on the lane axis.
    z_dn = jnp.transpose(z, (1, 0, 2, 3)).reshape(D, N).astype(jnp.float32)

    bytes_per_col = 4 * (2 * D + P * K + P)
    tile_n = _choose_tile_n(N, bytes_per_col)
    n_padded = ((N + tile_n - 1) // tile_n) * tile_n
    if n_padded != N:
        z_dn = jnp.pad(z_dn, ((0, 0), (0, n_padded - N)))

    zq_dn, prob_kn, idx_pn, sse = _run_pq_kernel(
        z_dn, codebooks.astype(jnp.float32), jsd_ts=jsd_ts, tile_n=tile_n,
        n_valid=N, mxu_bf16=mxu_bf16)

    zq_dn = zq_dn[:, :N]
    prob_kn = prob_kn[:, :N]
    idx_pn = idx_pn[:, :N]

    # (D, N) -> (B, D, H, W); channel order matches torch.cat(chunks, dim=1).
    z_q = jnp.transpose(zq_dn.reshape(D, B, H, W), (1, 0, 2, 3))

    # (P*K, N) -> (B, H, W, P*K)  (group-major along last dim, as torch.cat).
    prob = jnp.transpose(prob_kn.reshape(P * K, B, H, W), (1, 2, 3, 0))

    # indices: stacked per-quantizer maps (P, B, H, W)
    idx = idx_pn.reshape(P, B, H, W)

    # vq-loss = mean over P of (book + beta) * MSE_p
    #         = (book + beta) * sum(SSE partials) / (P * N * pd)
    total_sse = jnp.sum(sse)
    vq_loss = (book + beta) * total_sse / float(P * N * pd)
    outputs = {"vq-loss": vq_loss}

    # z_split as in torch.chunk(z, P, dim=1)
    z_split = tuple(z[:, i * pd:(i + 1) * pd] for i in range(P))
    z_quantized_list = tuple(z_q[:, i * pd:(i + 1) * pd] for i in range(P))

    return z_q, (z_split, z_quantized_list, idx), outputs, prob


# ---------------------------------------------------------------------------
# Pure-JAX reference (for a sanity check of kernel correctness).
# ---------------------------------------------------------------------------
def _reference(z_flat, codebooks, jsd_ts):
    dist = (jnp.sum(z_flat ** 2, axis=-1, keepdims=True)
            + jnp.sum(codebooks ** 2, axis=-1)[:, None, :]
            - 2.0 * jnp.einsum("pnd,pkd->pnk", z_flat, codebooks))
    prob = jax.nn.softmax(-dist / jsd_ts, axis=-1)
    idx = jnp.argmin(dist, axis=-1)
    z_q = jnp.take_along_axis(codebooks, idx[..., None], axis=1)
    return z_q, prob, idx


if __name__ == "__main__":
    # Small config consistent with the module.
    B, H, W = 2, 8, 8
    num_pq, num_codebook, embed_dim = 4, 16, 32
    pq_dim = embed_dim // num_pq
    beta, book, jsd_ts = 0.25, 1.0, 1.0

    key = jax.random.PRNGKey(0)
    k_z, k_cb = jax.random.split(key)
    z = jax.random.normal(k_z, (B, embed_dim, H, W), dtype=jnp.float32)
    # nn.Embedding init: uniform(-1/K, 1/K), one codebook per sub-quantizer.
    codebooks = jax.random.uniform(
        k_cb, (num_pq, num_codebook, pq_dim),
        minval=-1.0 / num_codebook, maxval=1.0 / num_codebook,
        dtype=jnp.float32)

    z_q, (z_split, z_q_list, z_idx), outs, dist_prob = jax.block_until_ready(
        product_quantizer_forward(z, codebooks, beta=beta, book=book,
                                  jsd_ts=jsd_ts))

    # Sanity check against a pure-JAX reference.
    N = B * H * W
    z_flat = jnp.transpose(
        z.reshape(B, num_pq, pq_dim, H, W), (1, 0, 3, 4, 2)
    ).reshape(num_pq, N, pq_dim)
    ref_zq, ref_prob, ref_idx = _reference(z_flat, codebooks, jsd_ts)
    got_zq = jnp.transpose(
        z_q.reshape(B, num_pq, pq_dim, H, W), (1, 0, 3, 4, 2)
    ).reshape(num_pq, N, pq_dim)
    got_prob = jnp.transpose(
        dist_prob.reshape(B, H, W, num_pq, num_codebook), (3, 0, 1, 2, 4)
    ).reshape(num_pq, N, num_codebook)
    got_idx = z_idx.reshape(num_pq, N)

    ref_loss = (book + beta) * jnp.mean((ref_zq - z_flat) ** 2)

    assert jnp.allclose(got_zq, ref_zq, atol=1e-5, rtol=1e-5)
    # prob uses the approx-reciprocal + Newton softmax denominator -> 1e-4.
    assert jnp.allclose(got_prob, ref_prob, atol=1e-4, rtol=1e-4)
    assert jnp.all(got_idx == ref_idx)
    assert jnp.allclose(outs["vq-loss"], ref_loss, atol=1e-6, rtol=1e-5)
    assert jnp.isfinite(outs["vq-loss"])

    print("KERNEL_OK")
</pallas_src>

<mosaic_0001>
module attributes {stable_mosaic.version = 11 : i64} {
  func.func @_pq_kernel(%arg0: i32, %arg1: memref<32x128xf32, #tpu.memory_space<vmem>>, %arg2: memref<4x16x8xf32, #tpu.memory_space<vmem>>, %arg3: memref<32x128xf32, #tpu.memory_space<vmem>>, %arg4: memref<64x128xf32, #tpu.memory_space<vmem>>, %arg5: memref<4x128xi32, #tpu.memory_space<vmem>>, %arg6: memref<1x1x1xf32, #tpu.memory_space<vmem>>) attributes {dimension_semantics = [#tpu.dimension_semantics<parallel>], iteration_bounds = array<i64: 1>, scalar_prefetch = 0 : i64, scratch_operands = 0 : i64, tpu.core_type = #tpu.core_type<tc>, window_params = [{transform_indices = @transform_0, window_bounds = array<i64: 32, 128>}, {pipeline_mode = #tpu.pipeline_mode<synchronous>, transform_indices = @transform_1, window_bounds = array<i64: 4, 16, 8>}, {transform_indices = @transform_2, window_bounds = array<i64: 32, 128>}, {transform_indices = @transform_3, window_bounds = array<i64: 64, 128>}, {transform_indices = @transform_4, window_bounds = array<i64: 4, 128>}, {transform_indices = @transform_5, window_bounds = array<i64: 1, 1, 1>}]} {
    %c0 = arith.constant 0 : index
    %c0_0 = arith.constant 0 : index
    %0 = vector.load %arg1[%c0, %c0_0] : memref<32x128xf32, #tpu.memory_space<vmem>>, vector<8x128xf32>
    %c0_1 = arith.constant 0 : index
    %c0_2 = arith.constant 0 : index
    %c0_3 = arith.constant 0 : index
    %1 = vector.load %arg2[%c0_1, %c0_2, %c0_3] : memref<4x16x8xf32, #tpu.memory_space<vmem>>, vector<1x16x8xf32>
    %2 = vector.shape_cast %1 : vector<1x16x8xf32> to vector<16x8xf32>
    %3 = arith.mulf %2, %2 : vector<16x8xf32>
    %cst = arith.constant dense<0.000000e+00> : vector<16xf32>
    %4 = vector.multi_reduction <add>, %3, %cst [1] : vector<16x8xf32> to vector<16xf32>
    %5 = vector.shape_cast %4 : vector<16xf32> to vector<16x1xf32>
    %cst_4 = arith.constant dense<0.000000e+00> : vector<16x128xf32>
    %6 = tpu.matmul %2, %0, %cst_4 {dimension_numbers = #tpu.dot_dimension_numbers<[1], [0], [0], [1], [0, 0, 1, 1], [], []>} : vector<16x8xf32>, vector<8x128xf32>, vector<16x128xf32> -> vector<16x128xf32>
    %cst_5 = arith.constant 2.000000e+00 : f32
    %7 = vector.broadcast %cst_5 : f32 to vector<16x128xf32>
    %8 = arith.mulf %7, %6 : vector<16x128xf32>
    %9 = vector.broadcast %5 : vector<16x1xf32> to vector<16x128xf32>
    %10 = arith.subf %9, %8 : vector<16x128xf32>
    %cst_6 = arith.constant -1.000000e+00 : f32
    %11 = vector.broadcast %cst_6 : f32 to vector<16x128xf32>
    %12 = arith.mulf %10, %11 : vector<16x128xf32>
    %cst_7 = arith.constant dense<0xFF800000> : vector<128xf32>
    %13 = vector.multi_reduction <maximumf>, %12, %cst_7 [0] : vector<16x128xf32> to vector<128xf32>
    %14 = vector.shape_cast %13 : vector<128xf32> to vector<1x128xf32>
    %15 = vector.broadcast %14 : vector<1x128xf32> to vector<16x128xf32>
    %16 = arith.subf %12, %15 : vector<16x128xf32>
    %17 = math.exp %16 : vector<16x128xf32>
    %cst_8 = arith.constant dense<0.000000e+00> : vector<128xf32>
    %18 = vector.multi_reduction <add>, %17, %cst_8 [0] : vector<16x128xf32> to vector<128xf32>
    %19 = vector.shape_cast %18 : vector<128xf32> to vector<1x128xf32>
    %20 = tpu.reciprocal %19 {approx = true} : vector<1x128xf32> -> vector<1x128xf32>
    %21 = arith.mulf %19, %20 : vector<1x128xf32>
    %cst_9 = arith.constant 2.000000e+00 : f32
    %22 = vector.broadcast %cst_9 : f32 to vector<1x128xf32>
    %23 = arith.subf %22, %21 : vector<1x128xf32>
    %24 = arith.mulf %20, %23 : vector<1x128xf32>
    %25 = vector.broadcast %24 : vector<1x128xf32> to vector<16x128xf32>
    %26 = arith.mulf %17, %25 : vector<16x128xf32>
    %c0_10 = arith.constant 0 : index
    %c0_11 = arith.constant 0 : index
    %27 = vector.load %arg4[%c0_10, %c0_11] : memref<64x128xf32, #tpu.memory_space<vmem>>, vector<16x128xf32>
    tpu.vector_store %arg4[%c0_10, %c0_11], %26 {strides = array<i32>} : memref<64x128xf32, #tpu.memory_space<vmem>>, vector<16x128xf32>,
    %cst_12 = arith.constant dense<0x7F800000> : vector<128xf32>
    %28 = vector.multi_reduction <minimumf>, %10, %cst_12 [0] : vector<16x128xf32> to vector<128xf32>
    %29 = vector.shape_cast %28 : vector<128xf32> to vector<1x128xf32>
    %30 = tpu.iota {dimensions = array<i32: 0>} : vector<16x128xi32>
    %31 = vector.broadcast %29 : vector<1x128xf32> to vector<16x128xf32>
    %32 = arith.cmpf oeq, %10, %31 : vector<16x128xf32>
    %c16_i32 = arith.constant 16 : i32
    %33 = vector.broadcast %c16_i32 : i32 to vector<16x128xi32>
    %34 = arith.select %32, %30, %33 : vector<16x128xi1>, vector<16x128xi32>
    %cst_13 = arith.constant dense<2147483647> : vector<128xi32>
    %35 = vector.multi_reduction <minsi>, %34, %cst_13 [0] : vector<16x128xi32> to vector<128xi32>
    %36 = vector.shape_cast %35 : vector<128xi32> to vector<1x128xi32>
    %c0_14 = arith.constant 0 : index
    %c0_15 = arith.constant 0 : index
    %37 = vector.load %arg5[%c0_14, %c0_15] : memref<4x128xi32, #tpu.memory_space<vmem>>, vector<1x128xi32>
    tpu.vector_store %arg5[%c0_14, %c0_15], %36 {strides = array<i32>} : memref<4x128xi32, #tpu.memory_space<vmem>>, vector<1x128xi32>,
    %38 = vector.broadcast %36 : vector<1x128xi32> to vector<16x128xi32>
    %39 = arith.cmpi eq, %30, %38 : vector<16x128xi32>
    %40 = arith.extui %39 : vector<16x128xi1> to vector<16x128xi32>
    %41 = arith.sitofp %40 : vector<16x128xi32> to vector<16x128xf32>
    %cst_16 = arith.constant dense<0.000000e+00> : vector<8x128xf32>
    %42 = tpu.matmul %2, %41, %cst_16 {dimension_numbers = #tpu.dot_dimension_numbers<[0], [0], [1], [1], [0, 1, 1, 1], [], []>} : vector<16x8xf32>, vector<16x128xf32>, vector<8x128xf32> -> vector<8x128xf32>
    %c0_17 = arith.constant 0 : index
    %c0_18 = arith.constant 0 : index
    %43 = vector.load %arg3[%c0_17, %c0_18] : memref<32x128xf32, #tpu.memory_space<vmem>>, vector<8x128xf32>
    tpu.vector_store %arg3[%c0_17, %c0_18], %42 {strides = array<i32>} : memref<32x128xf32, #tpu.memory_space<vmem>>, vector<8x128xf32>,
    %44 = arith.subf %42, %0 : vector<8x128xf32>
    %45 = arith.mulf %44, %44 : vector<8x128xf32>
    %46 = vector.shape_cast %45 : vector<8x128xf32> to vector<1x8x128xf32>
    %cst_19 = arith.constant dense<0.000000e+00> : vector<1xf32>
    %47 = vector.multi_reduction <add>, %46, %cst_19 [1, 2] : vector<1x8x128xf32> to vector<1xf32>
    %48 = vector.shape_cast %47 : vector<1xf32> to vector<1x1x1xf32>
    %49 = vector.extract %48[0, 0, 0] : f32 from vector<1x1x1xf32>
    %cst_20 = arith.constant 0.000000e+00 : f32
    %50 = arith.addf %cst_20, %49 : f32
    %c8 = arith.constant 8 : index
    %c0_21 = arith.constant 0 : index
    %51 = vector.load %arg1[%c8, %c0_21] : memref<32x128xf32, #tpu.memory_space<vmem>>, vector<8x128xf32>
    %c1 = arith.constant 1 : index
    %c0_22 = arith.constant 0 : index
    %c0_23 = arith.constant 0 : index
    %52 = vector.load %arg2[%c1, %c0_22, %c0_23] : memref<4x16x8xf32, #tpu.memory_space<vmem>>, vector<1x16x8xf32>
    %53 = vector.shape_cast %52 : vector<1x16x8xf32> to vector<16x8xf32>
    %54 = arith.mulf %53, %53 : vector<16x8xf32>
    %cst_24 = arith.constant dense<0.000000e+00> : vector<16xf32>
    %55 = vector.multi_reduction <add>, %54, %cst_24 [1] : vector<16x8xf32> to vector<16xf32>
    %56 = vector.shape_cast %55 : vector<16xf32> to vector<16x1xf32>
    %cst_25 = arith.constant dense<0.000000e+00> : vector<16x128xf32>
    %57 = tpu.matmul %53, %51, %cst_25 {dimension_numbers = #tpu.dot_dimension_numbers<[1], [0], [0], [1], [0, 0, 1, 1], [], []>} : vector<16x8xf32>, vector<8x128xf32>, vector<16x128xf32> -> vector<16x128xf32>
    %cst_26 = arith.constant 2.000000e+00 : f32
    %58 = vector.broadcast %cst_26 : f32 to vector<16x128xf32>
    %59 = arith.mulf %58, %57 : vector<16x128xf32>
    %60 = vector.broadcast %56 : vector<16x1xf32> to vector<16x128xf32>
    %61 = arith.subf %60, %59 : vector<16x128xf32>
    %cst_27 = arith.constant -1.000000e+00 : f32
    %62 = vector.broadcast %cst_27 : f32 to vector<16x128xf32>
    %63 = arith.mulf %61, %62 : vector<16x128xf32>
    %cst_28 = arith.constant dense<0xFF800000> : vector<128xf32>
    %64 = vector.multi_reduction <maximumf>, %63, %cst_28 [0] : vector<16x128xf32> to vector<128xf32>
    %65 = vector.shape_cast %64 : vector<128xf32> to vector<1x128xf32>
    %66 = vector.broadcast %65 : vector<1x128xf32> to vector<16x128xf32>
    %67 = arith.subf %63, %66 : vector<16x128xf32>
    %68 = math.exp %67 : vector<16x128xf32>
    %cst_29 = arith.constant dense<0.000000e+00> : vector<128xf32>
    %69 = vector.multi_reduction <add>, %68, %cst_29 [0] : vector<16x128xf32> to vector<128xf32>
    %70 = vector.shape_cast %69 : vector<128xf32> to vector<1x128xf32>
    %71 = tpu.reciprocal %70 {approx = true} : vector<1x128xf32> -> vector<1x128xf32>
    %72 = arith.mulf %70, %71 : vector<1x128xf32>
    %cst_30 = arith.constant 2.000000e+00 : f32
    %73 = vector.broadcast %cst_30 : f32 to vector<1x128xf32>
    %74 = arith.subf %73, %72 : vector<1x128xf32>
    %75 = arith.mulf %71, %74 : vector<1x128xf32>
    %76 = vector.broadcast %75 : vector<1x128xf32> to vector<16x128xf32>
    %77 = arith.mulf %68, %76 : vector<16x128xf32>
    %c16 = arith.constant 16 : index
    %c0_31 = arith.constant 0 : index
    %78 = vector.load %arg4[%c16, %c0_31] : memref<64x128xf32, #tpu.memory_space<vmem>>, vector<16x128xf32>
    tpu.vector_store %arg4[%c16, %c0_31], %77 {strides = array<i32>} : memref<64x128xf32, #tpu.memory_space<vmem>>, vector<16x128xf32>,
    %cst_32 = arith.constant dense<0x7F800000> : vector<128xf32>
    %79 = vector.multi_reduction <minimumf>, %61, %cst_32 [0] : vector<16x128xf32> to vector<128xf32>
    %80 = vector.shape_cast %79 : vector<128xf32> to vector<1x128xf32>
    %81 = tpu.iota {dimensions = array<i32: 0>} : vector<16x128xi32>
    %82 = vector.broadcast %80 : vector<1x128xf32> to vector<16x128xf32>
    %83 = arith.cmpf oeq, %61, %82 : vector<16x128xf32>
    %c16_i32_33 = arith.constant 16 : i32
    %84 = vector.broadcast %c16_i32_33 : i32 to vector<16x128xi32>
    %85 = arith.select %83, %81, %84 : vector<16x128xi1>, vector<16x128xi32>
    %cst_34 = arith.constant dense<2147483647> : vector<128xi32>
    %86 = vector.multi_reduction <minsi>, %85, %cst_34 [0] : vector<16x128xi32> to vector<128xi32>
    %87 = vector.shape_cast %86 : vector<128xi32> to vector<1x128xi32>
    %c1_35 = arith.constant 1 : index
    %c0_36 = arith.constant 0 : index
    %88 = vector.load %arg5[%c1_35, %c0_36] : memref<4x128xi32, #tpu.memory_space<vmem>>, vector<1x128xi32>
    tpu.vector_store %arg5[%c1_35, %c0_36], %87 {strides = array<i32>} : memref<4x128xi32, #tpu.memory_space<vmem>>, vector<1x128xi32>,
    %89 = vector.broadcast %87 : vector<1x128xi32> to vector<16x128xi32>
    %90 = arith.cmpi eq, %81, %89 : vector<16x128xi32>
    %91 = arith.extui %90 : vector<16x128xi1> to vector<16x128xi32>
    %92 = arith.sitofp %91 : vector<16x128xi32> to vector<16x128xf32>
    %cst_37 = arith.constant dense<0.000000e+00> : vector<8x128xf32>
    %93 = tpu.matmul %53, %92, %cst_37 {dimension_numbers = #tpu.dot_dimension_numbers<[0], [0], [1], [1], [0, 1, 1, 1], [], []>} : vector<16x8xf32>, vector<16x128xf32>, vector<8x128xf32> -> vector<8x128xf32>
    %c8_38 = arith.constant 8 : index
    %c0_39 = arith.constant 0 : index
    %94 = vector.load %arg3[%c8_38, %c0_39] : memref<32x128xf32, #tpu.memory_space<vmem>>, vector<8x128xf32>
    tpu.vector_store %arg3[%c8_38, %c0_39], %93 {strides = array<i32>} : memref<32x128xf32, #tpu.memory_space<vmem>>, vector<8x128xf32>,
    %95 = arith.subf %93, %51 : vector<8x128xf32>
    %96 = arith.mulf %95, %95 : vector<8x128xf32>
    %97 = vector.shape_cast %96 : vector<8x128xf32> to vector<1x8x128xf32>
    %cst_40 = arith.constant dense<0.000000e+00> : vector<1xf32>
    %98 = vector.multi_reduction <add>, %97, %cst_40 [1, 2] : vector<1x8x128xf32> to vector<1xf32>
    %99 = vector.shape_cast %98 : vector<1xf32> to vector<1x1x1xf32>
    %100 = vector.extract %99[0, 0, 0] : f32 from vector<1x1x1xf32>
    %101 = arith.addf %50, %100 : f32
    %c16_41 = arith.constant 16 : index
    %c0_42 = arith.constant 0 : index
    %102 = vector.load %arg1[%c16_41, %c0_42] : memref<32x128xf32, #tpu.memory_space<vmem>>, vector<8x128xf32>
    %c2 = arith.constant 2 : index
    %c0_43 = arith.constant 0 : index
    %c0_44 = arith.constant 0 : index
    %103 = vector.load %arg2[%c2, %c0_43, %c0_44] : memref<4x16x8xf32, #tpu.memory_space<vmem>>, vector<1x16x8xf32>
    %104 = vector.shape_cast %103 : vector<1x16x8xf32> to vector<16x8xf32>
    %105 = arith.mulf %104, %104 : vector<16x8xf32>
    %cst_45 = arith.constant dense<0.000000e+00> : vector<16xf32>
    %106 = vector.multi_reduction <add>, %105, %cst_45 [1] : vector<16x8xf32> to vector<16xf32>
    %107 = vector.shape_cast %106 : vector<16xf32> to vector<16x1xf32>
    %cst_46 = arith.constant dense<0.000000e+00> : vector<16x128xf32>
    %108 = tpu.matmul %104, %102, %cst_46 {dimension_numbers = #tpu.dot_dimension_numbers<[1], [0], [0], [1], [0, 0, 1, 1], [], []>} : vector<16x8xf32>, vector<8x128xf32>, vector<16x128xf32> -> vector<16x128xf32>
    %cst_47 = arith.constant 2.000000e+00 : f32
    %109 = vector.broadcast %cst_47 : f32 to vector<16x128xf32>
    %110 = arith.mulf %109, %108 : vector<16x128xf32>
    %111 = vector.broadcast %107 : vector<16x1xf32> to vector<16x128xf32>
    %112 = arith.subf %111, %110 : vector<16x128xf32>
    %cst_48 = arith.constant -1.000000e+00 : f32
    %113 = vector.broadcast %cst_48 : f32 to vector<16x128xf32>
    %114 = arith.mulf %112, %113 : vector<16x128xf32>
    %cst_49 = arith.constant dense<0xFF800000> : vector<128xf32>
    %115 = vector.multi_reduction <maximumf>, %114, %cst_49 [0] : vector<16x128xf32> to vector<128xf32>
    %116 = vector.shape_cast %115 : vector<128xf32> to vector<1x128xf32>
    %117 = vector.broadcast %116 : vector<1x128xf32> to vector<16x128xf32>
    %118 = arith.subf %114, %117 : vector<16x128xf32>
    %119 = math.exp %118 : vector<16x128xf32>
    %cst_50 = arith.constant dense<0.000000e+00> : vector<128xf32>
    %120 = vector.multi_reduction <add>, %119, %cst_50 [0] : vector<16x128xf32> to vector<128xf32>
    %121 = vector.shape_cast %120 : vector<128xf32> to vector<1x128xf32>
    %122 = tpu.reciprocal %121 {approx = true} : vector<1x128xf32> -> vector<1x128xf32>
    %123 = arith.mulf %121, %122 : vector<1x128xf32>
    %cst_51 = arith.constant 2.000000e+00 : f32
    %124 = vector.broadcast %cst_51 : f32 to vector<1x128xf32>
    %125 = arith.subf %124, %123 : vector<1x128xf32>
    %126 = arith.mulf %122, %125 : vector<1x128xf32>
    %127 = vector.broadcast %126 : vector<1x128xf32> to vector<16x128xf32>
    %128 = arith.mulf %119, %127 : vector<16x128xf32>
    %c32 = arith.constant 32 : index
    %c0_52 = arith.constant 0 : index
    %129 = vector.load %arg4[%c32, %c0_52] : memref<64x128xf32, #tpu.memory_space<vmem>>, vector<16x128xf32>
    tpu.vector_store %arg4[%c32, %c0_52], %128 {strides = array<i32>} : memref<64x128xf32, #tpu.memory_space<vmem>>, vector<16x128xf32>,
    %cst_53 = arith.constant dense<0x7F800000> : vector<128xf32>
    %130 = vector.multi_reduction <minimumf>, %112, %cst_53 [0] : vector<16x128xf32> to vector<128xf32>
    %131 = vector.shape_cast %130 : vector<128xf32> to vector<1x128xf32>
    %132 = tpu.iota {dimensions = array<i32: 0>} : vector<16x128xi32>
    %133 = vector.broadcast %131 : vector<1x128xf32> to vector<16x128xf32>
    %134 = arith.cmpf oeq, %112, %133 : vector<16x128xf32>
    %c16_i32_54 = arith.constant 16 : i32
    %135 = vector.broadcast %c16_i32_54 : i32 to vector<16x128xi32>
    %136 = arith.select %134, %132, %135 : vector<16x128xi1>, vector<16x128xi32>
    %cst_55 = arith.constant dense<2147483647> : vector<128xi32>
    %137 = vector.multi_reduction <minsi>, %136, %cst_55 [0] : vector<16x128xi32> to vector<128xi32>
    %138 = vector.shape_cast %137 : vector<128xi32> to vector<1x128xi32>
    %c2_56 = arith.constant 2 : index
    %c0_57 = arith.constant 0 : index
    %139 = vector.load %arg5[%c2_56, %c0_57] : memref<4x128xi32, #tpu.memory_space<vmem>>, vector<1x128xi32>
    tpu.vector_store %arg5[%c2_56, %c0_57], %138 {strides = array<i32>} : memref<4x128xi32, #tpu.memory_space<vmem>>, vector<1x128xi32>,
    %140 = vector.broadcast %138 : vector<1x128xi32> to vector<16x128xi32>
    %141 = arith.cmpi eq, %132, %140 : vector<16x128xi32>
    %142 = arith.extui %141 : vector<16x128xi1> to vector<16x128xi32>
    %143 = arith.sitofp %142 : vector<16x128xi32> to vector<16x128xf32>
    %cst_58 = arith.constant dense<0.000000e+00> : vector<8x128xf32>
    %144 = tpu.matmul %104, %143, %cst_58 {dimension_numbers = #tpu.dot_dimension_numbers<[0], [0], [1], [1], [0, 1, 1, 1], [], []>} : vector<16x8xf32>, vector<16x128xf32>, vector<8x128xf32> -> vector<8x128xf32>
    %c16_59 = arith.constant 16 : index
    %c0_60 = arith.constant 0 : index
    %145 = vector.load %arg3[%c16_59, %c0_60] : memref<32x128xf32, #tpu.memory_space<vmem>>, vector<8x128xf32>
    tpu.vector_store %arg3[%c16_59, %c0_60], %144 {strides = array<i32>} : memref<32x128xf32, #tpu.memory_space<vmem>>, vector<8x128xf32>,
    %146 = arith.subf %144, %102 : vector<8x128xf32>
    %147 = arith.mulf %146, %146 : vector<8x128xf32>
    %148 = vector.shape_cast %147 : vector<8x128xf32> to vector<1x8x128xf32>
    %cst_61 = arith.constant dense<0.000000e+00> : vector<1xf32>
    %149 = vector.multi_reduction <add>, %148, %cst_61 [1, 2] : vector<1x8x128xf32> to vector<1xf32>
    %150 = vector.shape_cast %149 : vector<1xf32> to vector<1x1x1xf32>
    %151 = vector.extract %150[0, 0, 0] : f32 from vector<1x1x1xf32>
    %152 = arith.addf %101, %151 : f32
    %c24 = arith.constant 24 : index
    %c0_62 = arith.constant 0 : index
    %153 = vector.load %arg1[%c24, %c0_62] : memref<32x128xf32, #tpu.memory_space<vmem>>, vector<8x128xf32>
    %c3 = arith.constant 3 : index
    %c0_63 = arith.constant 0 : index
    %c0_64 = arith.constant 0 : index
    %154 = vector.load %arg2[%c3, %c0_63, %c0_64] : memref<4x16x8xf32, #tpu.memory_space<vmem>>, vector<1x16x8xf32>
    %155 = vector.shape_cast %154 : vector<1x16x8xf32> to vector<16x8xf32>
    %156 = arith.mulf %155, %155 : vector<16x8xf32>
    %cst_65 = arith.constant dense<0.000000e+00> : vector<16xf32>
    %157 = vector.multi_reduction <add>, %156, %cst_65 [1] : vector<16x8xf32> to vector<16xf32>
    %158 = vector.shape_cast %157 : vector<16xf32> to vector<16x1xf32>
    %cst_66 = arith.constant dense<0.000000e+00> : vector<16x128xf32>
    %159 = tpu.matmul %155, %153, %cst_66 {dimension_numbers = #tpu.dot_dimension_numbers<[1], [0], [0], [1], [0, 0, 1, 1], [], []>} : vector<16x8xf32>, vector<8x128xf32>, vector<16x128xf32> -> vector<16x128xf32>
    %cst_67 = arith.constant 2.000000e+00 : f32
    %160 = vector.broadcast %cst_67 : f32 to vector<16x128xf32>
    %161 = arith.mulf %160, %159 : vector<16x128xf32>
    %162 = vector.broadcast %158 : vector<16x1xf32> to vector<16x128xf32>
    %163 = arith.subf %162, %161 : vector<16x128xf32>
    %cst_68 = arith.constant -1.000000e+00 : f32
    %164 = vector.broadcast %cst_68 : f32 to vector<16x128xf32>
    %165 = arith.mulf %163, %164 : vector<16x128xf32>
    %cst_69 = arith.constant dense<0xFF800000> : vector<128xf32>
    %166 = vector.multi_reduction <maximumf>, %165, %cst_69 [0] : vector<16x128xf32> to vector<128xf32>
    %167 = vector.shape_cast %166 : vector<128xf32> to vector<1x128xf32>
    %168 = vector.broadcast %167 : vector<1x128xf32> to vector<16x128xf32>
    %169 = arith.subf %165, %168 : vector<16x128xf32>
    %170 = math.exp %169 : vector<16x128xf32>
    %cst_70 = arith.constant dense<0.000000e+00> : vector<128xf32>
    %171 = vector.multi_reduction <add>, %170, %cst_70 [0] : vector<16x128xf32> to vector<128xf32>
    %172 = vector.shape_cast %171 : vector<128xf32> to vector<1x128xf32>
    %173 = tpu.reciprocal %172 {approx = true} : vector<1x128xf32> -> vector<1x128xf32>
    %174 = arith.mulf %172, %173 : vector<1x128xf32>
    %cst_71 = arith.constant 2.000000e+00 : f32
    %175 = vector.broadcast %cst_71 : f32 to vector<1x128xf32>
    %176 = arith.subf %175, %174 : vector<1x128xf32>
    %177 = arith.mulf %173, %176 : vector<1x128xf32>
    %178 = vector.broadcast %177 : vector<1x128xf32> to vector<16x128xf32>
    %179 = arith.mulf %170, %178 : vector<16x128xf32>
    %c48 = arith.constant 48 : index
    %c0_72 = arith.constant 0 : index
    %180 = vector.load %arg4[%c48, %c0_72] : memref<64x128xf32, #tpu.memory_space<vmem>>, vector<16x128xf32>
    tpu.vector_store %arg4[%c48, %c0_72], %179 {strides = array<i32>} : memref<64x128xf32, #tpu.memory_space<vmem>>, vector<16x128xf32>,
    %cst_73 = arith.constant dense<0x7F800000> : vector<128xf32>
    %181 = vector.multi_reduction <minimumf>, %163, %cst_73 [0] : vector<16x128xf32> to vector<128xf32>
    %182 = vector.shape_cast %181 : vector<128xf32> to vector<1x128xf32>
    %183 = tpu.iota {dimensions = array<i32: 0>} : vector<16x128xi32>
    %184 = vector.broadcast %182 : vector<1x128xf32> to vector<16x128xf32>
    %185 = arith.cmpf oeq, %163, %184 : vector<16x128xf32>
    %c16_i32_74 = arith.constant 16 : i32
    %186 = vector.broadcast %c16_i32_74 : i32 to vector<16x128xi32>
    %187 = arith.select %185, %183, %186 : vector<16x128xi1>, vector<16x128xi32>
    %cst_75 = arith.constant dense<2147483647> : vector<128xi32>
    %188 = vector.multi_reduction <minsi>, %187, %cst_75 [0] : vector<16x128xi32> to vector<128xi32>
    %189 = vector.shape_cast %188 : vector<128xi32> to vector<1x128xi32>
    %c3_76 = arith.constant 3 : index
    %c0_77 = arith.constant 0 : index
    %190 = vector.load %arg5[%c3_76, %c0_77] : memref<4x128xi32, #tpu.memory_space<vmem>>, vector<1x128xi32>
    tpu.vector_store %arg5[%c3_76, %c0_77], %189 {strides = array<i32>} : memref<4x128xi32, #tpu.memory_space<vmem>>, vector<1x128xi32>,
    %191 = vector.broadcast %189 : vector<1x128xi32> to vector<16x128xi32>
    %192 = arith.cmpi eq, %183, %191 : vector<16x128xi32>
    %193 = arith.extui %192 : vector<16x128xi1> to vector<16x128xi32>
    %194 = arith.sitofp %193 : vector<16x128xi32> to vector<16x128xf32>
    %cst_78 = arith.constant dense<0.000000e+00> : vector<8x128xf32>
    %195 = tpu.matmul %155, %194, %cst_78 {dimension_numbers = #tpu.dot_dimension_numbers<[0], [0], [1], [1], [0, 1, 1, 1], [], []>} : vector<16x8xf32>, vector<16x128xf32>, vector<8x128xf32> -> vector<8x128xf32>
    %c24_79 = arith.constant 24 : index
    %c0_80 = arith.constant 0 : index
    %196 = vector.load %arg3[%c24_79, %c0_80] : memref<32x128xf32, #tpu.memory_space<vmem>>, vector<8x128xf32>
    tpu.vector_store %arg3[%c24_79, %c0_80], %195 {strides = array<i32>} : memref<32x128xf32, #tpu.memory_space<vmem>>, vector<8x128xf32>,
    %197 = arith.subf %195, %153 : vector<8x128xf32>
    %198 = arith.mulf %197, %197 : vector<8x128xf32>
    %199 = vector.shape_cast %198 : vector<8x128xf32> to vector<1x8x128xf32>
    %cst_81 = arith.constant dense<0.000000e+00> : vector<1xf32>
    %200 = vector.multi_reduction <add>, %199, %cst_81 [1, 2] : vector<1x8x128xf32> to vector<1xf32>
    %201 = vector.shape_cast %200 : vector<1xf32> to vector<1x1x1xf32>
    %202 = vector.extract %201[0, 0, 0] : f32 from vector<1x1x1xf32>
    %203 = arith.addf %152, %202 : f32
    %204 = vector.broadcast %203 : f32 to vector<1x1x1xf32>
    %c0_82 = arith.constant 0 : index
    %c0_83 = arith.constant 0 : index
    %c0_84 = arith.constant 0 : index
    %205 = vector.load %arg6[%c0_82, %c0_83, %c0_84] : memref<1x1x1xf32, #tpu.memory_space<vmem>>, vector<1x1x1xf32>
    tpu.vector_store %arg6[%c0_82, %c0_83, %c0_84], %204 {strides = array<i32>} : memref<1x1x1xf32, #tpu.memory_space<vmem>>, vector<1x1x1xf32>,
    return
  }
  func.func @transform_0(%arg0: i32) -> (i32, i32) {
    %c0_i32 = arith.constant 0 : i32
    %c0_i32_0 = arith.constant 0 : i32
    return %c0_i32, %arg0 : i32, i32
  }
  func.func @transform_1(%arg0: i32) -> (i32, i32, i32) {
    %c0_i32 = arith.constant 0 : i32
    %c0_i32_0 = arith.constant 0 : i32
    %c0_i32_1 = arith.constant 0 : i32
    %c0_i32_2 = arith.constant 0 : i32
    return %c0_i32, %c0_i32_0, %c0_i32_1 : i32, i32, i32
  }
  func.func @transform_2(%arg0: i32) -> (i32, i32) {
    %c0_i32 = arith.constant 0 : i32
    %c0_i32_0 = arith.constant 0 : i32
    return %c0_i32, %arg0 : i32, i32
  }
  func.func @transform_3(%arg0: i32) -> (i32, i32) {
    %c0_i32 = arith.constant 0 : i32
    %c0_i32_0 = arith.constant 0 : i32
    return %c0_i32, %arg0 : i32, i32
  }
  func.func @transform_4(%arg0: i32) -> (i32, i32) {
    %c0_i32 = arith.constant 0 : i32
    %c0_i32_0 = arith.constant 0 : i32
    return %c0_i32, %arg0 : i32, i32
  }
  func.func @transform_5(%arg0: i32) -> (i32, i32, i32) {
    %c0_i32 = arith.constant 0 : i32
    %c0_i32_0 = arith.constant 0 : i32
    %c0_i32_1 = arith.constant 0 : i32
    return %arg0, %c0_i32, %c0_i32_0 : i32, i32, i32
  }
}

</mosaic_0001>

<bundles_post_ra>
// kernel: tpu_custom_call.1
= control target key start
LH: loop header
LB: loop body
LE: loop exit
PB: predicated region body
PF: predicated region fallthrough
CT: control target
= control target key end

     0   :  { %11 = vsyncpa [#allocation3], 0  ;;  %s1131_s0 = inlined_call_operand.vmem [shape: f32[32,128], index: 0, kind: input, shape index: {}]   ;;  %s1132_s1 = inlined_call_operand.vmem [shape: f32[4,16,8], index: 1, kind: input, shape index: {}]   ;;  %s1133_s2 = inlined_call_operand.hbm [shape: f32[32,128], index: 2, kind: output, shape index: {0}]   ;;  %s1134_s3 = inlined_call_operand.hbm [shape: f32[64,128], index: 3, kind: output, shape index: {1}]   ;;  %s1135_s4 = inlined_call_operand.hbm [shape: s32[4,128], index: 4, kind: output, shape index: {2}]   ;;  %s1136_s5 = inlined_call_operand.hbm [shape: f32[1,1,1], index: 5, kind: output, shape index: {3}]  }
   0x1   :  { %12 = vsyncpa [#allocation5], 0  ;;  %v997_v0 = vld [vmem:[%s1131_s0] sm:$0xff]  ;;  %vm23_vm0 = vcmask 64512   ;;  %v20_v2 = vld [vmem:[%s1132_s1 + $0x8] sm:$0xff] }
   0x2   :  { %v19_v1 = vld [vmem:[%s1132_s1] sm:$0xff]  ;;  %51 = vmatpush.msra.mxu0 %v997_v0  ;;  %814 = vmatpush.msra.mxu3 %v997_v0  ;;  %v787_v3 = vld [vmem:[%s1132_s1 + $0x10] sm:$0xff]  ;;  %v1015_v6 = vld [vmem:[%s1131_s0 + $0x8] sm:$0xff] }
   0x3   :  { %v21_v4 = vmul.f32 %v19_v1, %v19_v1  ;;  %780 = vmatmul.msk.f32.vlgmr.msra.gmra.mxu0 %vm23_vm0, %v19_v1  ;;  %781 = vmatmul.msk.f32.vlgmr.msra.gmra.mxu3 %vm23_vm0, %v20_v2  ;;  %v198_v5 = vmul.f32 %v787_v3, %v787_v3 }
   0x4   :  { %13 = vsyncpa [#allocation8], 0  ;;  %125 = vxpose.xlu1.b32.start [1/2] (short) (narrow) %v19_v1, 8  ;;  %v788_v7 = vld [vmem:[%s1132_s1 + $0x18] sm:$0xff]  ;;  %227 = vmatpush.msra.mxu2 %v1015_v6  ;;  %v22_v10 = vmul.f32 %v20_v2, %v20_v2  ;;  %v805_v14 = vld [vmem:[%s1132_s1 + $0x30] sm:$0xff]  ;;  %v100_v39 = vlaneseq  ;;  %vm157_vm10 = vcmask 130048  }
   0x5   :  { %v24_v8 = vsel %vm23_vm0, %v21_v4, 0.0  ;;  %v200_v9 = vsel %vm23_vm0, %v198_v5, 0.0  ;;  %789 = vmatmul.msk.f32.vlgmr.msra.gmra.mxu2 %vm23_vm0, %v787_v3  ;;  %v199_v11 = vmul.f32 %v788_v7, %v788_v7  ;;  %v542_v15 = vmul.f32 %v805_v14, %v805_v14  ;;  %v1034_v17 = vld [vmem:[%s1131_s0 + $0x18] sm:$0xff]  ;;  %v1039_v18 = vld [vmem:[%s1132_s1 + $0x20] sm:$0xff]  ;;  %s732_s19 = sshll.u32 %s1134_s3, 4  ;;  %s959_s20 = smov 128   ;;  %s733_s19 = int_to_ptr.hbm [resolvable:$true] %s732_s19 }
   0x6   :  { %25 = vadd.xlane.f32.xlu0 %v24_v8  ;;  %201 = vadd.xlane.f32.xlu2 %v200_v9  ;;  %v27_v12 = vsel %vm23_vm0, %v22_v10, 0.0  ;;  %v370_v19 = vmul.f32 %v1039_v18, %v1039_v18  ;;  %v806_v21 = vld [vmem:[%s1132_s1 + $0x38] sm:$0xff]  ;;  %v1052_v44 = vshrl.u32 %v100_v39, 7  ;;  %v1062_v9 = vld [vmem:[%s1132_s1 + $0x28] sm:$0xff]  ;;  %s960_s21 = smov 8   ;;  %s719_s24 = sshll.u32 %s1133_s2, 4  ;;  %s720_s24 = int_to_ptr.hbm [resolvable:$true] %s719_s24 }
   0x7   :  { %v203_v13 = vsel %vm23_vm0, %v199_v11, 0.0  ;;  %v544_v16 = vsel %vm23_vm0, %v542_v15, 0.0  ;;  %571 = vmatpush.msrb.mxu0 %v1034_v17  ;;  %v543_v22 = vmul.f32 %v806_v21, %v806_v21  ;;  %s961_s25 = smov [#allocation2]   ;;  %s962_s27 = smov [#allocation6]  }
   0x8   :  { %v372_v20 = vsel %vm23_vm0, %v370_v19, 0.0  ;;  %v1055_v53 = vadd.s32 8, %v1052_v44  ;;  %s717_s26 = sshll.u32 %s961_s25, 4  ;;  %s744_s28 = sshll.u32 %s962_s27, 4  ;;  %s718_s26 = int_to_ptr.vmem [resolvable:$true] %s717_s26  ;;  %s745_s28 = int_to_ptr.vmem [resolvable:$true] %s744_s28 }
   0x9   :  { %v547_v23 = vsel %vm23_vm0, %v543_v22, 0.0  ;;  %s746_s3 = sshll.u32 %s1135_s4, 4  ;;  %s757_s10 = sshll.u32 %s1136_s5, 4  ;;  %s747_s3 = int_to_ptr.hbm [resolvable:$true] %s746_s3  ;;  %s758_s10 = int_to_ptr.hbm [resolvable:$true] %s757_s10 }
   0xa   :  { %s963_s12 = smov [#allocation7]  }
   0xb   :  { %807 = vmatmul.msk.f32.vlgmr.msrb.gmra.mxu0 %vm23_vm0, %v805_v14  ;;  %s755_s13 = sshll.u32 %s963_s12, 4  ;;  %s756_s13 = int_to_ptr.vmem [resolvable:$true] %s755_s13 }
   0xc   :  { %126 = vxpose.xlu1.b32.end [2/2] (short) (narrow) %v20_v2, 8 }
   0xd   :  { %790 = vmatmul.msk.f32.gmra.mxu2 %vm23_vm0, %v788_v7 }
   0xe   :  { %28 = vadd.xlane.f32.xlu0 %v27_v12  ;;  %204 = vadd.xlane.f32.xlu2 %v203_v13 }
  0x13   :  { %808 = vmatmul.msk.f32.gmra.mxu0 %vm23_vm0, %v806_v21 }
  0x16   :  { %545 = vadd.xlane.f32.xlu2 %v544_v16  ;;  %373 = vadd.xlane.f32.xlu0 %v372_v20 }
  0x1e   :  { %548 = vadd.xlane.f32.xlu0 %v547_v23 }
  0x3f   :  { %298 = vxpose.xlu2.b32.start [1/2] (short) (narrow) %v787_v3, 8 }
  0x47   :  { %299 = vxpose.xlu2.b32.end [2/2] (short) (narrow) %v788_v7, 8  ;;  %470 = vxpose.xlu0.b32.start [1/2] (short) (narrow) %v1039_v18, 8 }
  0x4f   :  { %642 = vxpose.xlu2.b32.start [1/2] (short) (narrow) %v805_v14, 8  ;;  %471 = vxpose.xlu0.b32.end [2/2] (short) (narrow) %v1062_v9, 8 }
  0x57   :  { %643 = vxpose.xlu2.b32.end [2/2] (short) (narrow) %v806_v21, 8 }
  0x79   :  { %v26_v24 = vpop.xlane.xlu0 %25  ;;  %v202_v38 = vpop.xlane.xlu2 %201 }
  0x80   :  { %v53_v25 = vpop.f32.mrf.mxu0 }
  0x81   :  { %v59_v26 = vmul.f32 2.0, %v53_v25  ;;  %v29_v28 = vpop.xlane.xlu0 %28  ;;  %v205_v52 = vpop.xlane.xlu2 %204 }
  0x83   :  { %v61_v29 = vsub.f32 %v26_v24, %v59_v26 }
  0x85   :  { %v63_v32 = vmul.f32 -1.0, %v61_v29 }
  0x86   :  { %v56_v27 = vpop.f32.mrf.mxu3 }
  0x87   :  { %v60_v30 = vmul.f32 2.0, %v56_v27 }
  0x88   :  { %v229_v35 = vpop.f32.mrf.mxu2 }
  0x89   :  { %v62_v31 = vsub.f32 %v29_v28, %v60_v30  ;;  %v235_v48 = vmul.f32 2.0, %v229_v35  ;;  %v371_v28 = vmul.f32 %v1062_v9, %v1062_v9  ;;  %v1082_v35 = vld [vmem:[%s1131_s0 + $0x10] sm:$0xff]  ;;  %s958_s0 = smov [#allocation4]  }
  0x8a   :  { %s730_s16 = sshll.u32 %s958_s0, 4  ;;  %s731_s16 = int_to_ptr.vmem [resolvable:$true] %s730_s16 }
  0x8b   :  { %v64_v33 = vmul.f32 -1.0, %v62_v31  ;;  %v93_v34 = vmin.f32 %v61_v29, %v62_v31  ;;  %v237_v54 = vsub.f32 %v202_v38, %v235_v48 }
  0x8d   :  { %v65_v36 = vmax.f32 %v63_v32, %v64_v33  ;;  %v94_v37 = vrot.slane %v93_v34, 4  ;;  %v239_v20 = vmul.f32 -1.0, %v237_v54 }
  0x8f   :  { %v66_v40 = vrot.slane %v65_v36, 4  ;;  %v95_v41 = vmin.f32 %v93_v34, %v94_v37 }
  0x90   :  { %v232_v47 = vpop.f32.mrf.mxu2 }
  0x91   :  { %v67_v42 = vmax.f32 %v65_v36, %v66_v40  ;;  %v96_v43 = vrot.slane %v95_v41, 2  ;;  %v236_v49 = vmul.f32 2.0, %v232_v47 }
  0x93   :  { %v68_v45 = vrot.slane %v67_v42, 2  ;;  %v97_v46 = vmin.f32 %v95_v41, %v96_v43  ;;  %v238_v55 = vsub.f32 %v205_v52, %v236_v49 }
  0x95   :  { %v69_v50 = vmax.f32 %v67_v42, %v68_v45  ;;  %v98_v51 = vrot.slane %v97_v46, 1  ;;  %v269_v58 = vmin.f32 %v237_v54, %v238_v55  ;;  %v240_v21 = vmul.f32 -1.0, %v238_v55 }
  0x97   :  { %v70_v56 = vrot.slane %v69_v50, 1  ;;  %v99_v57 = vmin.f32 %v97_v46, %v98_v51  ;;  %v270_v62 = vrot.slane %v269_v58, 4  ;;  %v241_v24 = vmax.f32 %v239_v20, %v240_v21 }
  0x99   :  { %v71_v59 = vmax.f32 %v69_v50, %v70_v56  ;;  %vm103_vm1 = vcmp.eq.f32.partialorder %v61_v29, %v99_v57  ;;  %vm104_vm2 = vcmp.eq.f32.partialorder %v62_v31, %v99_v57  ;;  %v271_v3 = vmin.f32 %v269_v58, %v270_v62 }
  0x9a   :  { %v105_v60 = vsel %vm103_vm1, %v1052_v44, 16  ;;  %v106_v61 = vsel %vm104_vm2, %v1055_v53, 16  ;;  %v242_v30 = vrot.slane %v241_v24, 4  ;;  %v957_v31 = vmov 1.0  }
  0x9b   :  { %v72_v63 = vsub.f32 %v63_v32, %v71_v59  ;;  %v73_v1 = vsub.f32 %v64_v33, %v71_v59  ;;  %vm107_vm3 = vcmp.lt.s32.totalorder %v105_v60, %v106_v61  ;;  %v272_v8 = vrot.slane %v271_v3, 2  ;;  %v1089_v59 = vpop.xlane.xlu0 %373 }
  0x9c   :  { %v108_v2 = vsel %vm107_vm3, %v105_v60, %v106_v61  ;;  %v375_v33 = vsel %vm23_vm0, %v371_v28, 0.0  ;;  %v243_v36 = vmax.f32 %v241_v24, %v242_v30 }
  0x9d   :  { %v74_v4 = vmul.f32 1.442695, %v72_v63  ;;  %v76_v5 = vmul.f32 1.442695, %v73_v1  ;;  %v109_v7 = vrot.slane %v108_v2, 4  ;;  %v273_v11 = vmin.f32 %v271_v3, %v272_v8  ;;  %376 = vadd.xlane.f32.xlu1 %v375_v33  ;;  %v546_v3 = vpop.xlane.xlu2 %545 }
  0x9e   :  { %v244_v40 = vrot.slane %v243_v36, 2 }
  0x9f   :  { %831 = vpow2.f32 %v74_v4  ;;  %vm110_vm4 = vcmp.lt.s32.totalorder %v108_v2, %v109_v7  ;;  %v274_v13 = vrot.slane %v273_v11, 1 }
  0xa0   :  { %833 = vpow2.f32 %v76_v5  ;;  %v111_v10 = vsel %vm110_vm4, %v108_v2, %v109_v7  ;;  %v245_v42 = vmax.f32 %v243_v36, %v244_v40 }
  0xa1   :  { %v112_v12 = vrot.slane %v111_v10, 2  ;;  %v275_v15 = vmin.f32 %v273_v11, %v274_v13 }
  0xa2   :  { %v246_v47 = vrot.slane %v245_v42, 1 }
  0xa3   :  { %vm113_vm5 = vcmp.lt.s32.totalorder %v111_v10, %v112_v12  ;;  %vm276_vm6 = vcmp.eq.f32.partialorder %v237_v54, %v275_v15  ;;  %vm277_vm7 = vcmp.eq.f32.partialorder %v238_v55, %v275_v15  ;;  %v573_v55 = vpop.f32.mrf.mxu0  ;;  %v549_v4 = vpop.xlane.xlu0 %548 }
  0xa4   :  { %v114_v14 = vsel %vm113_vm5, %v111_v10, %v112_v12  ;;  %v278_v25 = vsel %vm276_vm6, %v1052_v44, 16  ;;  %v279_v27 = vsel %vm277_vm7, %v1055_v53, 16  ;;  %v247_v49 = vmax.f32 %v245_v42, %v246_v47 }
  0xa5   :  { %v1065_v16 = vpop.eup %831  ;;  %v115_v19 = vrot.slane %v114_v14, 1  ;;  %vm280_vm11 = vcmp.lt.s32.totalorder %v278_v25, %v279_v27  ;;  %v579_v63 = vmul.f32 2.0, %v573_v55 }
  0xa6   :  { %v1067_v22 = vpop.eup %833  ;;  %v281_v37 = vsel %vm280_vm11, %v278_v25, %v279_v27  ;;  %v248_v52 = vsub.f32 %v239_v20, %v247_v49  ;;  %v249_v54 = vsub.f32 %v240_v21, %v247_v49 }
  0xa7   :  { %v78_v23 = vadd.f32 %v1067_v22, %v1065_v16  ;;  %vm116_vm8 = vcmp.lt.s32.totalorder %v114_v14, %v115_v19  ;;  %v282_v38 = vrot.slane %v281_v37, 4  ;;  %v581_v8 = vsub.f32 %v546_v3, %v579_v63 }
  0xa8   :  { %v117_v26 = vsel %vm116_vm8, %v114_v14, %v115_v19  ;;  %v141_v32 = vpop.trf.xlu1  ;;  %v250_v56 = vmul.f32 1.442695, %v248_v52  ;;  %v252_v57 = vmul.f32 1.442695, %v249_v54 }
  0xa9   :  { %v79_v29 = vrot.slane %v78_v23, 4  ;;  %118 = vst [vmem:[#allocation6] sm:$0x1] %v117_v26  ;;  %vm120_vm9 = vcmp.eq.s32.totalorder %v1055_v53, %v117_v26  ;;  %vm119_vm12 = vcmp.eq.s32.totalorder %v1052_v44, %v117_v26  ;;  %vm283_vm13 = vcmp.lt.s32.totalorder %v281_v37, %v282_v38 }
  0xaa   :  { %784 = vmatpush.msk.msra.mxu1 %vm120_vm9, %v957_v31  ;;  %v284_v43 = vsel %vm283_vm13, %v281_v37, %v282_v38  ;;  %v583_v14 = vmul.f32 -1.0, %v581_v8 }
  0xab   :  { %v80_v34 = vadd.f32 %v79_v29, %v78_v23  ;;  %v285_v45 = vrot.slane %v284_v43, 2  ;;  %v576_v61 = vpop.f32.mrf.mxu0 }
  0xac   :  { %785 = vmatpush.msk.msra.mxu1 %vm119_vm12, %v957_v31  ;;  %v580_v1 = vmul.f32 2.0, %v576_v61 }
  0xad   :  { %v81_v39 = vrot.slane %v80_v34, 2  ;;  %786 = vmatmul.msk.f32.vlgmr.msra.gmra.mxu1 %vm157_vm10, %v141_v32  ;;  %vm286_vm14 = vcmp.lt.s32.totalorder %v284_v43, %v285_v45 }
  0xae   :  { %399 = vmatpush.msrb.mxu1 %v1082_v35  ;;  %v287_v50 = vsel %vm286_vm14, %v284_v43, %v285_v45  ;;  %v582_v10 = vsub.f32 %v549_v4, %v580_v1 }
  0xaf   :  { %v82_v41 = vadd.f32 %v81_v39, %v80_v34  ;;  %v288_v51 = vrot.slane %v287_v50, 1 }
  0xb0   :  { %v584_v15 = vmul.f32 -1.0, %v582_v10  ;;  %v613_v32 = vmin.f32 %v581_v8, %v582_v10 }
  0xb1   :  { %v83_v46 = vrot.slane %v82_v41, 1  ;;  %vm289_vm15 = vcmp.lt.s32.totalorder %v287_v50, %v288_v51 }
  0xb2   :  { %v290_v58 = vsel %vm289_vm15, %v287_v50, %v288_v51  ;;  %v614_v34 = vrot.slane %v613_v32, 4 }
  0xb3   :  { %v84_v48 = vadd.f32 %v83_v46, %v82_v41  ;;  %291 = vst [vmem:[#allocation6 + $0x1] sm:$0x1] %v290_v58  ;;  %vm293_vm1 = vcmp.eq.s32.totalorder %v1055_v53, %v290_v58  ;;  %vm292_vm2 = vcmp.eq.s32.totalorder %v1052_v44, %v290_v58 }
  0xb4   :  { %793 = vmatpush.msk.msrb.mxu3 %vm293_vm1, %v957_v31  ;;  %v615_v39 = vmin.f32 %v613_v32, %v614_v34 }
  0xb5   :  { %835 = vrcp.f32 %v84_v48  ;;  %798 = vmatmul.msk.f32.vlgmr.msrb.gmra.mxu1 %vm23_vm0, %v1039_v18 }
  0xb6   :  { %837 = vpow2.f32 %v250_v56  ;;  %794 = vmatpush.msk.msrb.mxu3 %vm292_vm2, %v957_v31  ;;  %v616_v41 = vrot.slane %v615_v39, 2 }
  0xb7   :  { %839 = vpow2.f32 %v252_v57 }
  0xb8   :  { %v617_v45 = vmin.f32 %v615_v39, %v616_v41 }
  0xba   :  { %v618_v47 = vrot.slane %v617_v45, 1 }
  0xbb   :  { %v836_v60 = vpop.eup %835 }
  0xbc   :  { %v86_v18 = vmul.f32 %v836_v60, %v84_v48  ;;  %v838_v2 = vpop.eup %837  ;;  %v619_v52 = vmin.f32 %v617_v45, %v618_v47 }
  0xbd   :  { %799 = vmatmul.msk.f32.gmra.mxu1 %vm23_vm0, %v1062_v9  ;;  %v840_v5 = vpop.eup %839  ;;  %v585_v9 = vmax.f32 %v583_v14, %v584_v15 }
  0xbe   :  { %v87_v62 = vsub.f32 2.0, %v86_v18  ;;  %v254_v11 = vadd.f32 %v840_v5, %v838_v2  ;;  %vm620_vm0 = vcmp.eq.f32.partialorder %v581_v8, %v619_v52  ;;  %vm621_vm3 = vcmp.eq.f32.partialorder %v582_v10, %v619_v52 }
  0xbf   :  { %v586_v21 = vrot.slane %v585_v9, 4  ;;  %v622_v56 = vsel %vm620_vm0, %v1052_v44, 16  ;;  %v623_v57 = vsel %vm621_vm3, %v1055_v53, 16 }
  0xc0   :  { %v88_v7 = vmul.f32 %v836_v60, %v87_v62  ;;  %v255_v19 = vrot.slane %v254_v11, 4  ;;  %vm624_vm4 = vcmp.lt.s32.totalorder %v622_v56, %v623_v57 }
  0xc1   :  { %v587_v24 = vmax.f32 %v585_v9, %v586_v21  ;;  %v625_v60 = vsel %vm624_vm4, %v622_v56, %v623_v57 }
  0xc2   :  { %v89_v12 = vmul.f32 %v1065_v16, %v88_v7  ;;  %v90_v13 = vmul.f32 %v1067_v22, %v88_v7  ;;  %v256_v20 = vadd.f32 %v255_v19, %v254_v11  ;;  %v626_v18 = vrot.slane %v625_v60, 4 }
  0xc3   :  { %v588_v26 = vrot.slane %v587_v24, 2 }
  0xc4   :  { %91 = vst [vmem:[#allocation4] sm:$0xff] %v89_v12  ;;  %v257_v23 = vrot.slane %v256_v20, 2  ;;  %vm627_vm5 = vcmp.lt.s32.totalorder %v625_v60, %v626_v18 }
  0xc5   :  { %92 = vst [vmem:[#allocation4 + $0x8] sm:$0xff] %v90_v13  ;;  %v589_v28 = vmax.f32 %v587_v24, %v588_v26  ;;  %v628_v63 = vsel %vm627_vm5, %v625_v60, %v626_v18 }
  0xc6   :  { %v258_v25 = vadd.f32 %v257_v23, %v256_v20  ;;  %v629_v1 = vrot.slane %v628_v63, 2 }
  0xc7   :  { %v590_v30 = vrot.slane %v589_v28, 1 }
  0xc8   :  { %v259_v27 = vrot.slane %v258_v25, 1  ;;  %vm630_vm6 = vcmp.lt.s32.totalorder %v628_v63, %v629_v1 }
  0xc9   :  { %v591_v16 = vmax.f32 %v589_v28, %v590_v30  ;;  %v631_v4 = vsel %vm630_vm6, %v628_v63, %v629_v1 }
  0xca   :  { %v260_v29 = vadd.f32 %v259_v27, %v258_v25 }
  0xcb   :  { %v592_v22 = vsub.f32 %v583_v14, %v591_v16  ;;  %v593_v33 = vsub.f32 %v584_v15, %v591_v16 }
  0xcc   :  { %841 = vrcp.f32 %v260_v29 }
  0xcd   :  { %v594_v36 = vmul.f32 1.442695, %v592_v22  ;;  %v596_v37 = vmul.f32 1.442695, %v593_v33 }
  0xcf   :  { %843 = vpow2.f32 %v594_v36 }
  0xd0   :  { %845 = vpow2.f32 %v596_v37 }
  0xd2   :  { %v842_v38 = vpop.eup %841 }
  0xd3   :  { %v262_v40 = vmul.f32 %v842_v38, %v260_v29 }
  0xd5   :  { %v263_v42 = vsub.f32 2.0, %v262_v40  ;;  %v844_v48 = vpop.eup %843 }
  0xd6   :  { %v846_v51 = vpop.eup %845 }
  0xd7   :  { %v264_v46 = vmul.f32 %v842_v38, %v263_v42  ;;  %v598_v54 = vadd.f32 %v846_v51, %v844_v48 }
  0xd8   :  { %v314_v43 = vpop.trf.xlu2 }
  0xd9   :  { %795 = vmatmul.msk.f32.vlgmr.msrb.gmra.mxu3 %vm157_vm10, %v314_v43  ;;  %v265_v49 = vmul.f32 %v838_v2, %v264_v46  ;;  %v266_v50 = vmul.f32 %v840_v5, %v264_v46  ;;  %v599_v55 = vrot.slane %v598_v54, 4  ;;  %v632_v5 = vrot.slane %v631_v4, 1 }
  0xdb   :  { %267 = vst [vmem:[#allocation4 + $0x10] sm:$0xff] %v265_v49  ;;  %v600_v58 = vadd.f32 %v599_v55, %v598_v54  ;;  %vm633_vm7 = vcmp.lt.s32.totalorder %v631_v4, %v632_v5 }
  0xdc   :  { %268 = vst [vmem:[#allocation4 + $0x18] sm:$0xff] %v266_v50  ;;  %v634_v7 = vsel %vm633_vm7, %v631_v4, %v632_v5 }
  0xdd   :  { %v601_v61 = vrot.slane %v600_v58, 2  ;;  %635 = vst [vmem:[#allocation6 + $0x3] sm:$0x1] %v634_v7  ;;  %vm637_vm8 = vcmp.eq.s32.totalorder %v1055_v53, %v634_v7  ;;  %vm636_vm9 = vcmp.eq.s32.totalorder %v1052_v44, %v634_v7 }
  0xde   :  { %811 = vmatpush.msk.msrb.mxu2 %vm637_vm8, %v957_v31 }
  0xdf   :  { %v602_v62 = vadd.f32 %v601_v61, %v600_v58 }
  0xe0   :  { %812 = vmatpush.msk.msrb.mxu2 %vm636_vm9, %v957_v31 }
  0xe1   :  { %v603_v2 = vrot.slane %v602_v62, 1 }
  0xe3   :  { %v604_v3 = vadd.f32 %v603_v2, %v602_v62 }
  0xe5   :  { %847 = vrcp.f32 %v604_v3 }
  0xe8   :  { %v658_v40 = vpop.trf.xlu2 }
  0xe9   :  { %813 = vmatmul.msk.f32.vlgmr.msrb.gmra.mxu2 %vm157_vm10, %v658_v40 }
  0xeb   :  { %v848_v8 = vpop.eup %847  ;;  %v486_v1 = vpop.trf.xlu0 }
  0xec   :  { %v606_v10 = vmul.f32 %v848_v8, %v604_v3 }
  0xee   :  { %v607_v11 = vsub.f32 2.0, %v606_v10 }
  0xf0   :  { %v608_v12 = vmul.f32 %v848_v8, %v607_v11 }
  0xf2   :  { %v609_v13 = vmul.f32 %v844_v48, %v608_v12  ;;  %v610_v14 = vmul.f32 %v846_v51, %v608_v12 }
  0xf4   :  { %611 = vst [vmem:[#allocation4 + $0x30] sm:$0xff] %v609_v13 }
  0xf5   :  { %612 = vst [vmem:[#allocation4 + $0x38] sm:$0xff] %v610_v14 }
 0x110   :  { %v377_v24 = vpop.xlane.xlu1 %376 }
 0x12a   :  { %v178_v15 = vpop.f32.mrf.mxu1 }
 0x12b   :  { %181 = vst [vmem:[#allocation2] sm:$0xff] %v178_v15  ;;  %v182_v19 = vsub.f32 %v178_v15, %v997_v0 }
 0x12d   :  { %v183_v9 = vmul.f32 %v182_v19, %v182_v19 }
 0x12f   :  { %184 = vadd.xlane.f32.xlu0 %v183_v9 }
 0x132   :  { %v401_v20 = vpop.f32.mrf.mxu1 }
 0x133   :  { %v407_v21 = vmul.f32 2.0, %v401_v20 }
 0x135   :  { %v409_v25 = vsub.f32 %v1089_v59, %v407_v21 }
 0x137   :  { %v411_v28 = vmul.f32 -1.0, %v409_v25 }
 0x13a   :  { %v404_v23 = vpop.f32.mrf.mxu1 }
 0x13b   :  { %v408_v26 = vmul.f32 2.0, %v404_v23 }
 0x13d   :  { %v410_v27 = vsub.f32 %v377_v24, %v408_v26 }
 0x13f   :  { %v412_v29 = vmul.f32 -1.0, %v410_v27  ;;  %v441_v30 = vmin.f32 %v409_v25, %v410_v27 }
 0x141   :  { %v413_v16 = vmax.f32 %v411_v28, %v412_v29  ;;  %v442_v32 = vrot.slane %v441_v30, 4 }
 0x143   :  { %v414_v22 = vrot.slane %v413_v16, 4  ;;  %v443_v33 = vmin.f32 %v441_v30, %v442_v32 }
 0x145   :  { %v415_v34 = vmax.f32 %v413_v16, %v414_v22  ;;  %v444_v36 = vrot.slane %v443_v33, 2 }
 0x147   :  { %v416_v0 = vrot.slane %v415_v34, 2  ;;  %v445_v37 = vmin.f32 %v443_v33, %v444_v36 }
 0x149   :  { %v417_v38 = vmax.f32 %v415_v34, %v416_v0  ;;  %v446_v39 = vrot.slane %v445_v37, 1 }
 0x14b   :  { %v418_v41 = vrot.slane %v417_v38, 1  ;;  %v447_v42 = vmin.f32 %v445_v37, %v446_v39 }
 0x14d   :  { %v419_v59 = vmax.f32 %v417_v38, %v418_v41  ;;  %vm448_vm11 = vcmp.eq.f32.partialorder %v409_v25, %v447_v42  ;;  %vm449_vm12 = vcmp.eq.f32.partialorder %v410_v27, %v447_v42 }
 0x14e   :  { %v450_v43 = vsel %vm448_vm11, %v1052_v44, 16  ;;  %v451_v45 = vsel %vm449_vm12, %v1055_v53, 16 }
 0x14f   :  { %v420_v46 = vsub.f32 %v411_v28, %v419_v59  ;;  %v421_v47 = vsub.f32 %v412_v29, %v419_v59  ;;  %vm452_vm13 = vcmp.lt.s32.totalorder %v450_v43, %v451_v45 }
 0x150   :  { %v453_v48 = vsel %vm452_vm13, %v450_v43, %v451_v45 }
 0x151   :  { %v422_v49 = vmul.f32 1.442695, %v420_v46  ;;  %v424_v50 = vmul.f32 1.442695, %v421_v47  ;;  %v454_v51 = vrot.slane %v453_v48, 4 }
 0x153   :  { %849 = vpow2.f32 %v422_v49  ;;  %vm455_vm14 = vcmp.lt.s32.totalorder %v453_v48, %v454_v51 }
 0x154   :  { %851 = vpow2.f32 %v424_v50  ;;  %v456_v52 = vsel %vm455_vm14, %v453_v48, %v454_v51 }
 0x155   :  { %v457_v54 = vrot.slane %v456_v52, 2 }
 0x157   :  { %vm458_vm15 = vcmp.lt.s32.totalorder %v456_v52, %v457_v54 }
 0x158   :  { %v459_v55 = vsel %vm458_vm15, %v456_v52, %v457_v54 }
 0x159   :  { %v850_v56 = vpop.eup %849  ;;  %v460_v57 = vrot.slane %v459_v55, 1 }
 0x15a   :  { %v852_v58 = vpop.eup %851 }
 0x15b   :  { %v426_v60 = vadd.f32 %v852_v58, %v850_v56  ;;  %vm461_vm1 = vcmp.lt.s32.totalorder %v459_v55, %v460_v57 }
 0x15c   :  { %v350_v18 = vpop.f32.mrf.mxu3  ;;  %v462_v61 = vsel %vm461_vm1, %v459_v55, %v460_v57 }
 0x15d   :  { %v427_v62 = vrot.slane %v426_v60, 4  ;;  %353 = vst [vmem:[#allocation2 + $0x8] sm:$0xff] %v350_v18  ;;  %v354_v63 = vsub.f32 %v350_v18, %v1015_v6  ;;  %vm465_vm2 = vcmp.eq.s32.totalorder %v1055_v53, %v462_v61  ;;  %vm464_vm0 = vcmp.eq.s32.totalorder %v1052_v44, %v462_v61 }
 0x15e   :  { %463 = vst [vmem:[#allocation6 + $0x2] sm:$0x1] %v462_v61  ;;  %802 = vmatpush.msk.msra.mxu3 %vm465_vm2, %v957_v31 }
 0x15f   :  { %v428_v2 = vadd.f32 %v427_v62, %v426_v60  ;;  %v355_v3 = vmul.f32 %v354_v63, %v354_v63 }
 0x160   :  { %803 = vmatpush.msk.msra.mxu3 %vm464_vm0, %v957_v31 }
 0x161   :  { %v429_v4 = vrot.slane %v428_v2, 2  ;;  %356 = vadd.xlane.f32.xlu2 %v355_v3  ;;  %804 = vmatmul.msk.f32.vlgmr.msra.gmra.mxu3 %vm157_vm10, %v486_v1  ;;  %vm711_vm10 = vcmask 0  }
 0x163   :  { %v430_v5 = vadd.f32 %v429_v4, %v428_v2 }
 0x165   :  { %v431_v7 = vrot.slane %v430_v5, 1 }
 0x167   :  { %v432_v8 = vadd.f32 %v431_v7, %v430_v5 }
 0x169   :  { %853 = vrcp.f32 %v432_v8 }
 0x16c   :  { %v694_v21 = vpop.f32.mrf.mxu2 }
 0x16d   :  { %697 = vst [vmem:[#allocation2 + $0x18] sm:$0xff] %v694_v21  ;;  %v698_v22 = vsub.f32 %v694_v21, %v1034_v17 }
 0x16f   :  { %v854_v6 = vpop.eup %853  ;;  %v699_v33 = vmul.f32 %v698_v22, %v698_v22 }
 0x170   :  { %v434_v53 = vmul.f32 %v854_v6, %v432_v8 }
 0x172   :  { %v435_v10 = vsub.f32 2.0, %v434_v53 }
 0x174   :  { %v436_v11 = vmul.f32 %v854_v6, %v435_v10 }
 0x176   :  { %v437_v12 = vmul.f32 %v850_v56, %v436_v11  ;;  %v438_v13 = vmul.f32 %v852_v58, %v436_v11 }
 0x178   :  { %439 = vst [vmem:[#allocation4 + $0x20] sm:$0xff] %v437_v12 }
 0x179   :  { %440 = vst [vmem:[#allocation4 + $0x28] sm:$0xff] %v438_v13 }
 0x17a   :  { %738 = dma.vmem_to_hbm [thread:$0]  %s731_s16, 1024, %s733_s19, [#allocation5], %s959_s20, %s959_s20, %s960_s21  }
 0x17b   :  { %749 = dma.vmem_to_hbm [thread:$0]  %s745_s28, 64, %s747_s3, [#allocation5]  }
 0x1a2   :  { %v185_v14 = vpop.xlane.xlu0 %184 }
 0x1a3   :  { %v186_v44 = vrot.slane %v185_v14, 4 }
 0x1a5   :  { %v187_v15 = vadd.f32 %v186_v44, %v185_v14 }
 0x1a7   :  { %v188_v31 = vrot.slane %v187_v15, 2 }
 0x1a9   :  { %v189_v19 = vadd.f32 %v188_v31, %v187_v15 }
 0x1ab   :  { %v190_v9 = vrot.slane %v189_v19, 1 }
 0x1ad   :  { %v191_v20 = vadd.f32 %v190_v9, %v189_v19 }
 0x1af   :  { %815 = vpush %v191_v20 }
 0x1d4   :  { %v357_v23 = vpop.xlane.xlu2 %356 }
 0x1d5   :  { %v358_v24 = vrot.slane %v357_v23, 4 }
 0x1d7   :  { %v359_v25 = vadd.f32 %v358_v24, %v357_v23 }
 0x1d9   :  { %v360_v26 = vrot.slane %v359_v25, 2 }
 0x1db   :  { %v361_v27 = vadd.f32 %v360_v26, %v359_v25 }
 0x1dd   :  { %v362_v28 = vrot.slane %v361_v27, 1 }
 0x1df   :  { %v363_v29 = vadd.f32 %v362_v28, %v361_v27 }
 0x1e0   :  { %s816_s2 = spop %815 }
 0x1e1   :  { %817 = vpush %v363_v29 }
 0x1e4   :  { %v522_v30 = vpop.f32.mrf.mxu3 }
 0x1e5   :  { %525 = vst [vmem:[#allocation2 + $0x10] sm:$0xff] %v522_v30  ;;  %v526_v16 = vsub.f32 %v522_v30, %v1082_v35 }
 0x1e6   :  { %725 = dma.vmem_to_hbm [thread:$0]  %s718_s26, 512, %s720_s24, [#allocation3], %s959_s20, %s959_s20, %s960_s21  }
 0x1e7   :  { %v527_v32 = vmul.f32 %v526_v16, %v526_v16 }
 0x1e9   :  { %528 = vadd.xlane.f32.xlu1 %v527_v32 }
 0x1f1   :  { %700 = vadd.xlane.f32.xlu1 %v699_v33 }
 0x212   :  { %s818_s4 = spop %817 }
 0x213   :  { %s365_s7 = sadd.f32 %s818_s4, %s816_s2 }
 0x25c   :  { %v529_v17 = vpop.xlane.xlu1 %528 }
 0x25d   :  { %v530_v35 = vrot.slane %v529_v17, 4 }
 0x25f   :  { %v531_v34 = vadd.f32 %v530_v35, %v529_v17 }
 0x261   :  { %v532_v36 = vrot.slane %v531_v34, 2 }
 0x263   :  { %v533_v0 = vadd.f32 %v532_v36, %v531_v34 }
 0x264   :  { %v701_v37 = vpop.xlane.xlu1 %700 }
 0x265   :  { %v702_v38 = vrot.slane %v701_v37, 4  ;;  %v534_v39 = vrot.slane %v533_v0, 1 }
 0x267   :  { %v703_v40 = vadd.f32 %v702_v38, %v701_v37  ;;  %v535_v41 = vadd.f32 %v534_v39, %v533_v0 }
 0x269   :  { %v704_v42 = vrot.slane %v703_v40, 2  ;;  %819 = vpush %v535_v41 }
 0x26b   :  { %v705_v59 = vadd.f32 %v704_v42, %v703_v40 }
 0x26d   :  { %v706_v43 = vrot.slane %v705_v59, 1 }
 0x26f   :  { %v707_v45 = vadd.f32 %v706_v43, %v705_v59 }
 0x271   :  { %821 = vpush %v707_v45 }
 0x29a   :  { %s820_s6 = spop %819 }
 0x29b   :  { %s537_s11 = sadd.f32 %s820_s6, %s365_s7 }
 0x2a2   :  { %s822_s14 = spop %821 }
 0x2a3   :  { %s709_s1 = sadd.f32 %s822_s14, %s537_s11 }
 0x2a5   :  { %v710_v46 = vstv %s709_s1 }
 0x2a6   :  { %712 = vst.msk [vmem:[#allocation7] sm:$0x1] %vm711_vm10, %v710_v46 }
 0x2a7   :  { %760 = dma.vmem_to_hbm [thread:$0]  %s756_s13, 16, %s758_s10, [#allocation8]  }
 0x2a8   :  { %951 = dma.done.wait [#allocation3], 512  }
 0x2a9   :  { %952 = vsyncadd [#allocation3], 4294966784 }
 0x2aa   :  { %953 = dma.done.wait [#allocation5], 1088  }
 0x2ab   :  { %954 = vsyncadd [#allocation5], 4294966208 }
 0x2ac   :  { %955 = dma.done.wait [#allocation8], 16  }
 0x2ad   :  { %956 = vsyncadd [#allocation8], 4294967280 }
 0x2ae   :  { %777 = vsyncpa [#allocation3], 1 }
 0x2af   :  { %778 = vsyncpa [#allocation5], 1 }
 0x2b0   :  { %779 = vsyncpa [#allocation8], 1 }

</bundles_post_ra>
